<compile_context>
chip_gen: v5e
topology: v5e:2x2
jax: 0.10.0
libtpu: 0.0.40
codegen_flags: <defaults>
</compile_context>

<pallas_src>
import functools

import jax
import jax.numpy as jnp
from jax.experimental import pallas as pl
from jax.experimental.pallas import tpu as pltpu


def mlp_ncf_kernel(ui_ref,            # (2*latent, TB) bf16 packed [user; item] tile
                   w0_ref,            # (L1, 2*latent) bf16 first Linear (unsplit)
                   w1_ref, w2_ref,    # (L2, L1), (L3, L2) bf16
                   b_ref,             # (max_width, 5) f32 packed [b0, b1, b2, ba, wa]
                   out_ref):          # (1, TB) f32 lane-dense output row
    f32 = jnp.float32
    l1 = w0_ref.shape[0]   # fc0 output width
    l2 = w1_ref.shape[0]   # fc1 output width
    l3 = w2_ref.shape[0]   # fc2 output width

    consts = b_ref[...]                 # (max_width, 5) f32
    b0 = consts[:l1, 0:1]               # (L1, 1)
    b1 = consts[:l2, 1:2]               # (L2, 1)
    b2 = consts[:l3, 2:3]               # (L3, 1)
    ba = consts[0:1, 3:4]               # (1, 1)   affine bias
    wa = consts[:l3, 4:5]               # (L3, 1)  affine weight column

    # fc0: single K=16 MXU pass on the packed [u; i] stream (no concat, no
    # split-dot).  Accumulate in f32, bias + ReLU in f32 on the VPU.
    h = jnp.dot(w0_ref[...], ui_ref[...], preferred_element_type=f32)
    h = jnp.maximum(h + b0, 0.0)        # (L1, TB) f32

    # fc1 / fc2: cast activations to the weight dtype (bf16) for the MXU.
    h = jnp.dot(w1_ref[...], h.astype(w1_ref.dtype), preferred_element_type=f32)
    h = jnp.maximum(h + b1, 0.0)        # (L2, TB) f32

    h = jnp.dot(w2_ref[...], h.astype(w2_ref.dtype), preferred_element_type=f32)
    h = jnp.maximum(h + b2, 0.0)        # (L3, TB) f32

    # affine_output (hidden -> 1): VPU multiply + sublane (XLU) reduction
    # instead of an N=1 MXU matmul; result is already lane-dense (1, TB).
    logits = jnp.sum(h * wa, axis=0, keepdims=True) + ba
    out_ref[...] = jax.nn.sigmoid(logits).astype(out_ref.dtype)


def prepare_params(params, compute_dtype=jnp.bfloat16):
    """One-time conversion to the kernel-ready layout.

    * Embedding tables pre-cast to bf16 and pre-transposed to (latent, rows),
      so the per-call gather is a column gather with no transpose/cast pass.
    * Hidden-layer weights pre-cast to bf16 (MXU-native on v6e/v7x, halves
      streamed bytes everywhere).
    * Biases + affine head packed into one padded f32 block (single DMA).
    """
    cd = compute_dtype
    bias_cols = [params["b0"], params["b1"], params["b2"], params["ba"],
                 params["wa"].reshape(-1)]
    max_w = max(int(b.shape[0]) for b in bias_cols)

    def _col(b):
        return jnp.pad(b.astype(jnp.float32), (0, max_w - b.shape[0]))[:, None]

    bias_pack = jnp.concatenate([_col(b) for b in bias_cols], axis=1)  # (max_w, 5)
    return {
        "emb_user_T": params["emb_user"].astype(cd).T,   # (latent, num_rows) bf16
        "emb_item_T": params["emb_item"].astype(cd).T,   # (latent, num_rows) bf16
        "w0": params["w0"].astype(cd),                   # (L1, 2*latent)
        "w1": params["w1"].astype(cd),                   # (L2, L1)
        "w2": params["w2"].astype(cd),                   # (L3, L2)
        "bias_pack": bias_pack,                          # (max_w, 5) f32
    }


@functools.partial(jax.jit, static_argnames=("tile_b",))
def mlp_forward(user_indices, item_indices, kparams, tile_b=None):
    emb_u_t = kparams["emb_user_T"]
    emb_i_t = kparams["emb_item_T"]
    latent = emb_u_t.shape[0]

    B = user_indices.shape[0]
    if tile_b is None:
        # Amortize the ~0.35 µs per-grid-step overhead with large tiles while
        # keeping >= 8 tiles so v7x's two TensorCores both get work on the
        # parallel batch axis (and the tail tile stays a small fraction).
        t = -(-B // 8)                                   # cdiv(B, 8)
        tile_b = max(256, min(16384, ((t + 255) // 256) * 256))
    num_tiles = pl.cdiv(B, tile_b)
    b_pad = num_tiles * tile_b
    # Pad the tail tile with a valid index (0); padded rows are sliced off.
    uidx = jnp.pad(user_indices, (0, b_pad - B))
    iidx = jnp.pad(item_indices, (0, b_pad - B))

    # Single packed (2*latent, b_pad) bf16 stream: column-gather from the
    # pre-transposed bf16 tables — no transpose and no cast pass per call.
    # TODO(synk): fuse this gather into the kernel (resident bf16 VMEM tables
    # + streamed int32 index tiles) once Mosaic's dynamic-take lowering is
    # verified; that would cut the dominant HBM stream to ~4 B/row of indices.
    ui_t = jnp.concatenate(
        [jnp.take(emb_u_t, uidx, axis=1),                # (latent, b_pad)
         jnp.take(emb_i_t, iidx, axis=1)], axis=0)       # (2*latent, b_pad)

    w0, w1, w2 = kparams["w0"], kparams["w1"], kparams["w2"]
    bias_pack = kparams["bias_pack"]

    const_spec = lambda shape: pl.BlockSpec(shape, lambda i: (0, 0))

    out = pl.pallas_call(
        mlp_ncf_kernel,
        out_shape=jax.ShapeDtypeStruct((1, b_pad), jnp.float32),
        grid=(num_tiles,),
        in_specs=[
            # Packed embedding tile, streamed & double-buffered by BlockSpec.
            # (Raise to pipeline_mode=pl.Buffered(3) only if a trace shows
            #  exposed DMA at step boundaries.)
            pl.BlockSpec((2 * latent, tile_b), lambda i: (0, i)),
            const_spec(w0.shape),          # weights stay VMEM-resident
            const_spec(w1.shape),
            const_spec(w2.shape),
            const_spec(bias_pack.shape),
        ],
        out_specs=pl.BlockSpec((1, tile_b), lambda i: (0, i)),
        compiler_params=pltpu.CompilerParams(
            dimension_semantics=("parallel",)),
    )(ui_t, w0, w1, w2, bias_pack)

    return out[0, :B][:, None]   # (B, 1), matches MLP.forward output shape


def init_params(key, num_users, num_items, latent_dim_mlp, layers):
    """Deterministic synthetic init; shapes follow the PyTorch __init__."""
    n_fc = len(layers) - 1
    ks = jax.random.split(key, 2 + 2 * n_fc + 2)
    params = {
        # NOTE: NCF.__init__ builds the *item* embedding with num_users rows
        # (a quirk of the reference code); we reproduce those shapes.
        "emb_user": jax.random.normal(ks[0], (num_users, latent_dim_mlp), jnp.float32) * 0.1,
        "emb_item": jax.random.normal(ks[1], (num_users, latent_dim_mlp), jnp.float32) * 0.1,
    }
    for idx, (in_size, out_size) in enumerate(zip(layers[:-1], layers[1:])):
        kw, kb = ks[2 + 2 * idx], ks[3 + 2 * idx]
        params[f"w{idx}"] = (jax.random.normal(kw, (out_size, in_size), jnp.float32)
                             / jnp.sqrt(float(in_size)))
        params[f"b{idx}"] = jax.random.normal(kb, (out_size,), jnp.float32) * 0.01
    params["wa"] = (jax.random.normal(ks[-2], (1, layers[-1]), jnp.float32)
                    / jnp.sqrt(float(layers[-1])))
    params["ba"] = jax.random.normal(ks[-1], (1,), jnp.float32) * 0.01
    return params


def reference_forward(user_indices, item_indices, params, num_fc,
                      compute_dtype=jnp.bfloat16):
    """Plain-JAX reference mirroring MLP.forward (same bf16 casts as kernel)."""
    cd = compute_dtype
    u = params["emb_user"].astype(cd)[user_indices]
    i = params["emb_item"].astype(cd)[item_indices]
    v = jnp.concatenate([u, i], axis=-1)
    for idx in range(num_fc):
        w = params[f"w{idx}"].astype(cd)
        v = jnp.dot(v.astype(cd), w.T, preferred_element_type=jnp.float32)
        v = jnp.maximum(v + params[f"b{idx}"], 0.0)
    logits = v @ params["wa"].T + params["ba"]
    return jax.nn.sigmoid(logits)


if __name__ == "__main__":
    # Config consistent with the module: latent_dim_mlp=8 so layers[0]=16.
    config_layers = [16, 32, 16, 8]
    latent_dim_mlp = 8
    num_users = 100
    num_items = 100
    batch = 2000          # exercises multiple grid tiles + tail padding

    key = jax.random.PRNGKey(0)
    kp, ku, ki = jax.random.split(key, 3)
    params = init_params(kp, num_users, num_items, latent_dim_mlp, config_layers)
    kparams = prepare_params(params)   # one-time bf16 / transposed / packed layout

    user_indices = jax.random.randint(ku, (batch,), 0, num_users, dtype=jnp.int32)
    # The reference module builds the item table with num_users rows (quirk),
    # so item indices must also stay < num_users; assert instead of relying on
    # silent jnp.take clamping.
    item_indices = jax.random.randint(ki, (batch,), 0, num_users, dtype=jnp.int32)
    assert int(jnp.max(user_indices)) < params["emb_user"].shape[0]
    assert int(jnp.max(item_indices)) < params["emb_item"].shape[0]

    rating = mlp_forward(user_indices, item_indices, kparams)
    rating = jax.block_until_ready(rating)

    ref = reference_forward(user_indices, item_indices, params,
                            num_fc=len(config_layers) - 1)
    assert rating.shape == (batch, 1)
    max_err = float(jnp.max(jnp.abs(rating - ref)))
    assert jnp.allclose(rating, ref, atol=5e-4, rtol=5e-4), max_err
    print("KERNEL_OK")
</pallas_src>

<mosaic_0001>
module attributes {stable_mosaic.version = 11 : i64} {
  func.func @mlp_ncf_kernel(%arg0: i32, %arg1: memref<16x256xbf16, #tpu.memory_space<vmem>>, %arg2: memref<32x16xbf16, #tpu.memory_space<vmem>>, %arg3: memref<16x32xbf16, #tpu.memory_space<vmem>>, %arg4: memref<8x16xbf16, #tpu.memory_space<vmem>>, %arg5: memref<32x5xf32, #tpu.memory_space<vmem>>, %arg6: memref<1x256xf32, #tpu.memory_space<vmem>>) attributes {dimension_semantics = [#tpu.dimension_semantics<parallel>], iteration_bounds = array<i64: 8>, scalar_prefetch = 0 : i64, scratch_operands = 0 : i64, tpu.core_type = #tpu.core_type<tc>, window_params = [{transform_indices = @transform_0, window_bounds = array<i64: 16, 256>}, {pipeline_mode = #tpu.pipeline_mode<synchronous>, transform_indices = @transform_1, window_bounds = array<i64: 32, 16>}, {pipeline_mode = #tpu.pipeline_mode<synchronous>, transform_indices = @transform_2, window_bounds = array<i64: 16, 32>}, {pipeline_mode = #tpu.pipeline_mode<synchronous>, transform_indices = @transform_3, window_bounds = array<i64: 8, 16>}, {pipeline_mode = #tpu.pipeline_mode<synchronous>, transform_indices = @transform_4, window_bounds = array<i64: 32, 5>}, {transform_indices = @transform_5, window_bounds = array<i64: 1, 256>}]} {
    %c0 = arith.constant 0 : index
    %c0_0 = arith.constant 0 : index
    %0 = vector.load %arg5[%c0, %c0_0] : memref<32x5xf32, #tpu.memory_space<vmem>>, vector<32x5xf32>
    %1 = vector.extract_strided_slice %0 {offsets = [0, 0], sizes = [32, 1], strides = [1, 1]} : vector<32x5xf32> to vector<32x1xf32>
    %2 = vector.extract_strided_slice %0 {offsets = [0, 1], sizes = [16, 1], strides = [1, 1]} : vector<32x5xf32> to vector<16x1xf32>
    %3 = vector.extract_strided_slice %0 {offsets = [0, 2], sizes = [8, 1], strides = [1, 1]} : vector<32x5xf32> to vector<8x1xf32>
    %4 = vector.extract_strided_slice %0 {offsets = [0, 3], sizes = [1, 1], strides = [1, 1]} : vector<32x5xf32> to vector<1x1xf32>
    %5 = vector.extract_strided_slice %0 {offsets = [0, 4], sizes = [8, 1], strides = [1, 1]} : vector<32x5xf32> to vector<8x1xf32>
    %c0_1 = arith.constant 0 : index
    %c0_2 = arith.constant 0 : index
    %6 = vector.load %arg2[%c0_1, %c0_2] : memref<32x16xbf16, #tpu.memory_space<vmem>>, vector<32x16xbf16>
    %c0_3 = arith.constant 0 : index
    %c0_4 = arith.constant 0 : index
    %7 = vector.load %arg1[%c0_3, %c0_4] : memref<16x256xbf16, #tpu.memory_space<vmem>>, vector<16x256xbf16>
    %cst = arith.constant dense<0.000000e+00> : vector<32x256xf32>
    %8 = tpu.matmul %6, %7, %cst {dimension_numbers = #tpu.dot_dimension_numbers<[1], [0], [0], [1], [0, 0, 1, 1], [], []>} : vector<32x16xbf16>, vector<16x256xbf16>, vector<32x256xf32> -> vector<32x256xf32>
    %9 = vector.broadcast %1 : vector<32x1xf32> to vector<32x256xf32>
    %10 = arith.addf %8, %9 : vector<32x256xf32>
    %cst_5 = arith.constant 0.000000e+00 : f32
    %11 = vector.broadcast %cst_5 : f32 to vector<32x256xf32>
    %12 = arith.maximumf %10, %11 : vector<32x256xf32>
    %c0_6 = arith.constant 0 : index
    %c0_7 = arith.constant 0 : index
    %13 = vector.load %arg3[%c0_6, %c0_7] : memref<16x32xbf16, #tpu.memory_space<vmem>>, vector<16x32xbf16>
    %14 = arith.truncf %12 : vector<32x256xf32> to vector<32x256xbf16>
    %cst_8 = arith.constant dense<0.000000e+00> : vector<16x256xf32>
    %15 = tpu.matmul %13, %14, %cst_8 {dimension_numbers = #tpu.dot_dimension_numbers<[1], [0], [0], [1], [0, 0, 1, 1], [], []>} : vector<16x32xbf16>, vector<32x256xbf16>, vector<16x256xf32> -> vector<16x256xf32>
    %16 = vector.broadcast %2 : vector<16x1xf32> to vector<16x256xf32>
    %17 = arith.addf %15, %16 : vector<16x256xf32>
    %cst_9 = arith.constant 0.000000e+00 : f32
    %18 = vector.broadcast %cst_9 : f32 to vector<16x256xf32>
    %19 = arith.maximumf %17, %18 : vector<16x256xf32>
    %c0_10 = arith.constant 0 : index
    %c0_11 = arith.constant 0 : index
    %20 = vector.load %arg4[%c0_10, %c0_11] : memref<8x16xbf16, #tpu.memory_space<vmem>>, vector<8x16xbf16>
    %21 = arith.truncf %19 : vector<16x256xf32> to vector<16x256xbf16>
    %cst_12 = arith.constant dense<0.000000e+00> : vector<8x256xf32>
    %22 = tpu.matmul %20, %21, %cst_12 {dimension_numbers = #tpu.dot_dimension_numbers<[1], [0], [0], [1], [0, 0, 1, 1], [], []>} : vector<8x16xbf16>, vector<16x256xbf16>, vector<8x256xf32> -> vector<8x256xf32>
    %23 = vector.broadcast %3 : vector<8x1xf32> to vector<8x256xf32>
    %24 = arith.addf %22, %23 : vector<8x256xf32>
    %cst_13 = arith.constant 0.000000e+00 : f32
    %25 = vector.broadcast %cst_13 : f32 to vector<8x256xf32>
    %26 = arith.maximumf %24, %25 : vector<8x256xf32>
    %27 = vector.broadcast %5 : vector<8x1xf32> to vector<8x256xf32>
    %28 = arith.mulf %26, %27 : vector<8x256xf32>
    %cst_14 = arith.constant dense<0.000000e+00> : vector<256xf32>
    %29 = vector.multi_reduction <add>, %28, %cst_14 [0] : vector<8x256xf32> to vector<256xf32>
    %30 = vector.shape_cast %29 : vector<256xf32> to vector<1x256xf32>
    %31 = vector.broadcast %4 : vector<1x1xf32> to vector<1x256xf32>
    %32 = arith.addf %30, %31 : vector<1x256xf32>
    %33 = arith.negf %32 : vector<1x256xf32>
    %34 = math.exp %33 : vector<1x256xf32>
    %cst_15 = arith.constant 1.000000e+00 : f32
    %35 = vector.broadcast %cst_15 : f32 to vector<1x256xf32>
    %36 = arith.addf %35, %34 : vector<1x256xf32>
    %37 = arith.divf %35, %36 : vector<1x256xf32>
    %c0_16 = arith.constant 0 : index
    %c0_17 = arith.constant 0 : index
    %38 = vector.load %arg6[%c0_16, %c0_17] : memref<1x256xf32, #tpu.memory_space<vmem>>, vector<1x256xf32>
    tpu.vector_store %arg6[%c0_16, %c0_17], %37 {strides = array<i32>} : memref<1x256xf32, #tpu.memory_space<vmem>>, vector<1x256xf32>,
    return
  }
  func.func @transform_0(%arg0: i32) -> (i32, i32) {
    %c0_i32 = arith.constant 0 : i32
    %c0_i32_0 = arith.constant 0 : i32
    return %c0_i32, %arg0 : i32, i32
  }
  func.func @transform_1(%arg0: i32) -> (i32, i32) {
    %c0_i32 = arith.constant 0 : i32
    %c0_i32_0 = arith.constant 0 : i32
    %c0_i32_1 = arith.constant 0 : i32
    return %c0_i32, %c0_i32_0 : i32, i32
  }
  func.func @transform_2(%arg0: i32) -> (i32, i32) {
    %c0_i32 = arith.constant 0 : i32
    %c0_i32_0 = arith.constant 0 : i32
    %c0_i32_1 = arith.constant 0 : i32
    return %c0_i32, %c0_i32_0 : i32, i32
  }
  func.func @transform_3(%arg0: i32) -> (i32, i32) {
    %c0_i32 = arith.constant 0 : i32
    %c0_i32_0 = arith.constant 0 : i32
    %c0_i32_1 = arith.constant 0 : i32
    return %c0_i32, %c0_i32_0 : i32, i32
  }
  func.func @transform_4(%arg0: i32) -> (i32, i32) {
    %c0_i32 = arith.constant 0 : i32
    %c0_i32_0 = arith.constant 0 : i32
    %c0_i32_1 = arith.constant 0 : i32
    return %c0_i32, %c0_i32_0 : i32, i32
  }
  func.func @transform_5(%arg0: i32) -> (i32, i32) {
    %c0_i32 = arith.constant 0 : i32
    %c0_i32_0 = arith.constant 0 : i32
    return %c0_i32, %arg0 : i32, i32
  }
}

</mosaic_0001>

<bundles_post_ra>
// kernel: mlp_forward.1
= control target key start
LH: loop header
LB: loop body
LE: loop exit
PB: predicated region body
PF: predicated region fallthrough
CT: control target
= control target key end

     0   :  { %s742_s18 = smov 0   ;;  %s744_s19 = smov 0   ;;  %s837_s0 = inlined_call_operand.vmem [shape: bf16[16,2048], index: 0, kind: input, shape index: {}]   ;;  %s838_s1 = inlined_call_operand.vmem [shape: bf16[32,16], index: 1, kind: input, shape index: {}]   ;;  %s839_s2 = inlined_call_operand.vmem [shape: bf16[16,32], index: 2, kind: input, shape index: {}]   ;;  %s840_s3 = inlined_call_operand.vmem [shape: bf16[8,16], index: 3, kind: input, shape index: {}]   ;;  %s841_s4 = inlined_call_operand.vmem [shape: f32[32,5], index: 4, kind: input, shape index: {}]   ;;  %s842_s5 = inlined_call_operand.vmem [shape: f32[1,2048], index: 5, kind: output, shape index: {}]  }
   0x1   :  { %s746_s20 = smov 0  }
   0x2 LB: > { %s591_s21 = sadd.s32 4294967295, %s705_s20   ;;  %s759_s22 = sadd.s32 1, %s705_s20   ;;  %s705_s20 = sphi %s746_s20, %s847_s20   ;;  %s701_s19 = sphi %s744_s19, %s846_s19   ;;  %s697_s18 = sphi %s742_s18, %s845_s18  }
   0x3   : > { %s19_s23 = ssub.s32 %s705_s20, %s759_s22  ;;  %s22_s24 = sadd.s32 1, %s701_s19 }
   0x4   : > { %p20_p0 = scmp.eq.s32.totalorder %s19_s23, 0  ;;  %p29_p1 = scmp.ne.s32.totalorder %s701_s19, %s697_s18 }
   0x5   : > { %p30_p2 = scmp.eq.s32.totalorder %s705_s20, 0  ;;  %p594_p4 = scmp.ge.s32.totalorder %s705_s20, 8 }
   0x6   : > { %s768_s25 = scalar_select %p20_p0, %s701_s19, %s22_s24  }
   0x7   : > { %p31_p3 = por %p30_p2, %p29_p1  ;;  %177 = sbr.rel (%p594_p4) target bundleno = 18 (0x12), region = 32 }
   0xc   : > { %180 = sbr.rel (!%p31_p3) target bundleno = 18 (0x12), region = 36  ;;  %s182_s26 = sand.u32 (%p31_p3), 1, %s701_s19  }
   0xd   : > { %s633_s27 = sshll.u32 (%p31_p3), %s705_s20, 3  ;;  %s595_s28 = sshll.u32 (%p31_p3), %s182_s26, 4 }
   0xe   : > { %s187_s6 = scalar_lea.vmem (%p31_p3), %s837_s0, %s633_s27  ;;  %s184_s7 = scalar_lea.vmem (%p31_p3), [#allocation2], %s595_s28 }
   0xf   : > { %v218_v0 = vld [vmem:[%s187_s6] sm:$0xff] (%p31_p3) }
  0x10   : > { %v220_v1 = vld [vmem:[%s187_s6 + $0x40] sm:$0xff] (%p31_p3)  ;;  %219 = vst [vmem:[%s184_s7] sm:$0xff] (%p31_p3), %v218_v0 }
  0x11   : > { %221 = vst [vmem:[%s184_s7 + $0x8] sm:$0xff] %v220_v1 }
  0x12 PF: > { %p598_p5 = scmp.ge.s32.totalorder %s705_s20, 1  ;;  %p226_p6 = scmp.lt.s32.totalorder %s705_s20, 9 }
  0x14   : > { %p227_p7 = pnand %p598_p5, %p226_p6 }
  0x15   : > { %s233_s8 = sand.u32 (!%p227_p7), 1, %s697_s18   ;;  %s600_s7 = sshll.u32 (!%p227_p7), %s591_s21, 1 }
  0x16   : > { %230 = sbr.rel (%p227_p7) target bundleno = 531 (0x213), region = 74  ;;  %s599_s11 = sshll.u32 (!%p227_p7), %s233_s8, 4 }
  0x17   : > { %s235_s14 = scalar_lea.vmem (!%p227_p7), [#allocation2], %s599_s11  ;;  %p261_p8 = scmp.lt.s32.totalorder (!%p227_p7), %s600_s7, 15 }
  0x1b   : > { %v782_v2 = vld [vmem:[%s841_s4] sm:$0xff]  ;;  %v707_v3 = vmov 0   ;;  %v268_v4 = vld [vmem:[%s841_s4 + $0x10] sm:$0xff]  ;;  %v637_v6 = vld [vmem:[%s235_s14 + $0x4] sm:$0xf0]  ;;  %vm316_vm0 = vcmask 130048  }
  0x1c   : > { %669 = vset.pattern.permute.xlu1 %v707_v3  ;;  %668 = vset.pattern.permute.xlu0 %v707_v3  ;;  %v611_v5 = vld [vmem:[%s235_s14] sm:$0xf]  ;;  %v636_v7 = vld [vmem:[%s235_s14 + $0x4] sm:$0xf]  ;;  %v613_v9 = vld [vmem:[%s235_s14 + $0x8] sm:$0xf0] }
  0x1d   : > { %278 = vperm.xlu1 %669, %v782_v2   ;;  %288 = vperm.xlu0 %668, %v268_v4   ;;  %v612_v8 = vor.u32 %v637_v6, %v611_v5  ;;  %v616_v10 = vor.u32 %v636_v7, %v613_v9  ;;  %v634_v11 = vld [vmem:[%s838_s1] sm:$0xff]  ;;  %v267_v12 = vld [vmem:[%s841_s4 + $0x8] sm:$0xff]  ;;  %v269_v13 = vld [vmem:[%s841_s4 + $0x18] sm:$0xff]  ;;  %v708_v18 = vmov 1   ;;  %vm388_vm1 = vcmask 261120   ;;  %s849_s7 = smov (!%p261_p8, %s600_s7), 15 }
  0x1e   : > { %v635_v14 = vld [vmem:[%s838_s1 + $0x8] sm:$0xff]  ;;  %670 = vset.pattern.permute.xlu2 %v708_v18  ;;  %v638_v48 = vld [vmem:[%s839_s2] sm:$0xff]  ;;  %v709_v49 = vmov 2   ;;  %v710_v50 = vmov 4   ;;  %v711_v51 = vmov 3   ;;  %vm527_vm9 = vcmask 1040384   ;;  %s263_s8 = scalar_lea.vmem %s842_s5, %s849_s7 }
  0x1f   : > { %330 = vmatpush.bf16.msra.mxu0 %v612_v8  ;;  %349 = vmatpush.bf16.msra.mxu1 %v616_v10 }
  0x20   : > { %376 = vperm.xlu2 %670, %v782_v2  }
  0x22   : > { %617 = vmatmul.msk.bf16.vlgmr.msra.gmra.mxu0 %vm316_vm0, %v634_v11  ;;  %619 = vmatmul.msk.bf16.vlgmr.msra.gmra.mxu1 %vm316_vm0, %v634_v11 }
  0x25   : > { %283 = vperm.xlu1 %669, %v267_v12   ;;  %293 = vperm.xlu0 %668, %v269_v13  }
  0x28   : > { %380 = vperm.xlu2 %670, %v267_v12  }
  0x2d   : > { %671 = vset.pattern.permute.xlu0 %v709_v49  ;;  %672 = vset.pattern.permute.xlu1 %v710_v50  ;;  %v530_v50 = vlaneseq }
  0x2e   : > { %428 = vperm.xlu0 %671, %v782_v2   ;;  %463 = vperm.xlu1 %672, %v782_v2  }
  0x2f   : > { %vm532_vm10 = vcmp.lt.s32.totalorder %v530_v50, 256 }
  0x30   : > { %673 = vset.pattern.permute.xlu2 %v711_v51 }
  0x31   : > { %481 = vperm.xlu2 %673, %v782_v2   ;;  %v424_v2 = vld [vmem:[%s840_s3] sm:$0xf] }
  0x32   : > { %618 = vmatmul.msk.bf16.gmra.mxu0 %vm316_vm0, %v635_v14  ;;  %620 = vmatmul.msk.bf16.gmra.mxu1 %vm316_vm0, %v635_v14 }
  0x36   : > { %674 = vset.pattern.permute.xlu0 %v711_v51 }
  0x7a   : > { %v377_v52 = vpop.permute.xlu2 %376 }
  0x82   : > { %v381_v56 = vpop.permute.xlu2 %380 }
  0x8f   : > { %v279_v20 = vpop.permute.xlu1 %278  ;;  %v289_v21 = vpop.permute.xlu0 %288 }
  0x97   : > { %v284_v24 = vpop.permute.xlu1 %283  ;;  %v294_v26 = vpop.permute.xlu0 %293 }
  0x9f   : > { %v332_v15 = vpop.f32.mrf.mxu0  ;;  %v351_v16 = vpop.f32.mrf.mxu1 }
  0xa0   : > { %v333_v34 = vadd.f32 %v332_v15, %v279_v20  ;;  %v352_v37 = vadd.f32 %v351_v16, %v279_v20  ;;  %v429_v5 = vpop.permute.xlu0 %428  ;;  %v464_v10 = vpop.permute.xlu1 %463 }
  0xa2   : > { %v361_v44 = vmax.f32 %v333_v34, 0.0  ;;  %v362_v45 = vmax.f32 %v352_v37, 0.0 }
  0xa7   : > { %v334_v17 = vpop.f32.mrf.mxu0  ;;  %v353_v19 = vpop.f32.mrf.mxu1 }
  0xa8   : > { %v335_v29 = vadd.f32 %v334_v17, %v284_v24  ;;  %v354_v32 = vadd.f32 %v353_v19, %v284_v24 }
  0xaa   : > { %v363_v40 = vmax.f32 %v335_v29, 0.0  ;;  %v364_v42 = vmax.f32 %v354_v32, 0.0 }
  0xac   : > { %v371_v46 = vpack.c.bf16 %v363_v40, %v361_v44  ;;  %v372_v47 = vpack.c.bf16 %v364_v42, %v362_v45 }
  0xaf   : > { %v337_v22 = vpop.f32.mrf.mxu0  ;;  %v356_v23 = vpop.f32.mrf.mxu1 }
  0xb0   : > { %v338_v25 = vadd.f32 %v337_v22, %v289_v21  ;;  %v357_v27 = vadd.f32 %v356_v23, %v289_v21 }
  0xb2   : > { %v365_v35 = vmax.f32 %v338_v25, 0.0  ;;  %v366_v38 = vmax.f32 %v357_v27, 0.0 }
  0xb7   : > { %v339_v28 = vpop.f32.mrf.mxu0  ;;  %v358_v31 = vpop.f32.mrf.mxu1 }
  0xb8   : > { %v340_v30 = vadd.f32 %v339_v28, %v294_v26  ;;  %v359_v33 = vadd.f32 %v358_v31, %v294_v26  ;;  %v482_v26 = vpop.permute.xlu2 %481 }
  0xba   : > { %v367_v36 = vmax.f32 %v340_v30, 0.0  ;;  %v368_v39 = vmax.f32 %v359_v33, 0.0 }
  0xbc   : > { %v373_v41 = vpack.c.bf16 %v367_v36, %v365_v35  ;;  %v374_v43 = vpack.c.bf16 %v368_v39, %v366_v38 }
  0xbe   : > { %398 = vmatpush.bf16.msra.mxu2 %v373_v41  ;;  %412 = vmatpush.bf16.msra.mxu3 %v374_v43 }
  0xc2   : > { %399 = vmatpush.bf16.msra.mxu2 %v371_v46  ;;  %413 = vmatpush.bf16.msra.mxu3 %v372_v47 }
  0xc5   : > { %625 = vmatmul.msk.bf16.vlgmr.msra.gmra.mxu2 %vm388_vm1, %v638_v48  ;;  %626 = vmatmul.msk.bf16.vlgmr.msra.gmra.mxu3 %vm388_vm1, %v638_v48 }
 0x148   : > { %v401_v53 = vpop.f32.mrf.mxu2  ;;  %v415_v54 = vpop.f32.mrf.mxu3 }
 0x149   : > { %v402_v55 = vadd.f32 %v401_v53, %v377_v52  ;;  %v416_v57 = vadd.f32 %v415_v54, %v377_v52 }
 0x14b   : > { %v420_v62 = vmax.f32 %v402_v55, 0.0  ;;  %v421_v0 = vmax.f32 %v416_v57, 0.0 }
 0x150   : > { %v403_v58 = vpop.f32.mrf.mxu2  ;;  %v417_v60 = vpop.f32.mrf.mxu3 }
 0x151   : > { %v404_v59 = vadd.f32 %v403_v58, %v381_v56  ;;  %v418_v61 = vadd.f32 %v417_v60, %v381_v56 }
 0x153   : > { %v422_v63 = vmax.f32 %v404_v59, 0.0  ;;  %v423_v1 = vmax.f32 %v418_v61, 0.0 }
 0x155   : > { %v425_v3 = vpack.c.bf16 %v422_v63, %v420_v62  ;;  %v426_v4 = vpack.c.bf16 %v423_v1, %v421_v0 }
 0x157   : > { %441 = vmatpush.bf16.msrb.mxu2 %v425_v3  ;;  %454 = vmatpush.bf16.msrb.mxu3 %v426_v4 }
 0x15a   : > { %627 = vmatmul.msk.bf16.vlgmr.msrb.gmra.mxu2 %vm316_vm0, %v424_v2  ;;  %628 = vmatmul.msk.bf16.vlgmr.msrb.gmra.mxu3 %vm316_vm0, %v424_v2 }
 0x1dd   : > { %v443_v6 = vpop.f32.mrf.mxu2  ;;  %v456_v8 = vpop.f32.mrf.mxu3 }
 0x1de   : > { %v444_v7 = vadd.f32 %v443_v6, %v429_v5  ;;  %v457_v9 = vadd.f32 %v456_v8, %v429_v5 }
 0x1e0   : > { %v460_v11 = vmax.f32 %v444_v7, 0.0  ;;  %v461_v12 = vmax.f32 %v457_v9, 0.0 }
 0x1e2   : > { %v466_v13 = vmul.f32 %v464_v10, %v460_v11  ;;  %v467_v14 = vmul.f32 %v464_v10, %v461_v12 }
 0x1e4   : > { %v468_v15 = vrot.slane %v466_v13, 4  ;;  %v474_v16 = vrot.slane %v467_v14, 4 }
 0x1e5   : > { %v445_v17 = vpop.f32.mrf.mxu2  ;;  %v458_v19 = vpop.f32.mrf.mxu3 }
 0x1e6   : > { %v469_v18 = vadd.f32 %v468_v15, %v466_v13  ;;  %v475_v20 = vadd.f32 %v474_v16, %v467_v14 }
 0x1e8   : > { %v470_v21 = vrot.slane %v469_v18, 2  ;;  %v476_v22 = vrot.slane %v475_v20, 2 }
 0x1ea   : > { %v471_v23 = vadd.f32 %v470_v21, %v469_v18  ;;  %v477_v24 = vadd.f32 %v476_v22, %v475_v20 }
 0x1ec   : > { %v472_v25 = vrot.slane %v471_v23, 1  ;;  %v478_v27 = vrot.slane %v477_v24, 1 }
 0x1ee   : > { %v473_v28 = vadd.f32 %v472_v25, %v471_v23  ;;  %v479_v29 = vadd.f32 %v478_v27, %v477_v24 }
 0x1f0   : > { %v484_v30 = vadd.f32 %v482_v26, %v473_v28  ;;  %v485_v31 = vadd.f32 %v482_v26, %v479_v29 }
 0x1f2   : > { %v629_v32 = vmul.f32 -1.442695, %v484_v30  ;;  %v630_v33 = vmul.f32 -1.442695, %v485_v31 }
 0x1f4   : > { %675 = vpow2.f32 %v629_v32 }
 0x1f5   : > { %677 = vpow2.f32 %v630_v33 }
 0x1fa   : > { %v676_v34 = vpop.eup %675 }
 0x1fb   : > { %v678_v35 = vpop.eup %677  ;;  %v492_v36 = vadd.f32 1.0, %v676_v34 }
 0x1fc   : > { %v493_v37 = vadd.f32 1.0, %v678_v35 }
 0x1fd   : > { %679 = vrcp.f32 %v492_v36  ;;  %vm499_vm4 = vweird.f32 %v492_v36  ;;  %v505_v49 = vand.u32 2147483648, %v492_v36  ;;  %v503_v52 = vand.u32 2147483647, %v492_v36 }
 0x1fe   : > { %681 = vrcp.f32 %v493_v37  ;;  %v520_v45 = vand.u32 2147483648, %v493_v37  ;;  %v518_v47 = vand.u32 2147483647, %v493_v37  ;;  %vm514_vm6 = vweird.f32 %v493_v37 }
 0x1ff   : > { %v506_v57 = vor.u32 1.1754944e-38, %v505_v49  ;;  %vm504_vm11 = vcmp.eq.f32.partialorder %v503_v52, 8.507059e+37 }
 0x200   : > { %v521_v54 = vor.u32 1.1754944e-38, %v520_v45  ;;  %vm519_vm8 = vcmp.eq.f32.partialorder %v518_v47, 8.507059e+37 }
 0x203   : > { %v680_v38 = vpop.eup %679 }
 0x204   : > { %v682_v39 = vpop.eup %681  ;;  %v495_v40 = vmul.f32 %v680_v38, %v492_v36  ;;  %vm500_vm2 = vweird.f32 %v680_v38 }
 0x205   : > { %v510_v41 = vmul.f32 %v682_v39, %v493_v37  ;;  %vm515_vm3 = vweird.f32 %v682_v39  ;;  %vm818_vm5 = vmor %vm499_vm4, %vm500_vm2 }
 0x206   : > { %v496_v42 = vsub.f32 1.0, %v495_v40  ;;  %vm516_vm7 = vmor %vm514_vm6, %vm515_vm3 }
 0x207   : > { %v511_v43 = vsub.f32 1.0, %v510_v41 }
 0x208   : > { %v497_v44 = vmul.f32 %v680_v38, %v496_v42 }
 0x209   : > { %v512_v46 = vmul.f32 %v682_v39, %v511_v43 }
 0x20a   : > { %v498_v48 = vadd.f32 %v680_v38, %v497_v44 }
 0x20b   : > { %v513_v53 = vadd.f32 %v682_v39, %v512_v46 }
 0x20c   : > { %v502_v55 = vsel %vm818_vm5, %v680_v38, %v498_v48 }
 0x20d   : > { %v517_v56 = vsel %vm516_vm7, %v682_v39, %v513_v53  ;;  %v507_v60 = vsel %vm504_vm11, %v506_v57, %v502_v55 }
 0x20e   : > { %v522_v58 = vsel %vm519_vm8, %v521_v54, %v517_v56 }
 0x20f   : > { %v526_v59 = vrot.slane %v522_v58, 7 }
 0x211   : > { %v528_v61 = vsel %vm527_vm9, %v507_v60, %v526_v59 }
 0x212   : > { %534 = vst.msk [vmem:[%s263_s8] sm:$0x3] %vm532_vm10, %v528_v61 }
 0x213 PF: > { %p12_p9 = scmp.ge.s32.totalorder %s759_s22, 10   ;;  %s845_s18 = smov %s701_s19 }
 0x214   : > { %s846_s19 = smov %s768_s25  ;;  %s847_s20 = smov %s759_s22 }
 0x215   :  { %14 = sbr.rel (!%p12_p9) target bundleno = 2 (0x2), region = 113 }

</bundles_post_ra>
